<compile_context>
chip_gen: v5e
topology: v5e:2x2
jax: 0.10.0
libtpu: 0.0.40
codegen_flags: <defaults>
</compile_context>

<pallas_src>
import jax
import jax.numpy as jnp
from jax.experimental import pallas as pl
from jax.experimental.pallas import tpu as pltpu

VMEM = pltpu.MemorySpace.VMEM
SMEM = pltpu.MemorySpace.SMEM


# ----------------------------------------------------------------------------
# Fused kernel: encoder -> S-way VQ -> decoder
# ----------------------------------------------------------------------------
def _fused_vqvae_kernel(x_ref, enc_w_ref, enc_b_ref, cbT_ref, cbP_ref, esq_ref,
                        dec_w_ref, dec_b_ref,
                        recon_ref, quant_ref, codes_ref, ppl_ref):
    S, hid, K = cbT_ref.shape
    x = x_ref[...]                                            # (B, in)
    B = x.shape[0]

    # encoder: z = x @ W_e + b_e                              (B, hid = S*D)
    z = (jnp.dot(x, enc_w_ref[...], preferred_element_type=jnp.float32)
         + enc_b_ref[...])

    lane_k = jax.lax.broadcasted_iota(jnp.int32, (B, K), 1)   # (B, K)
    col_s = jax.lax.broadcasted_iota(jnp.int32, (B, S), 1)    # (B, S)

    quant = jnp.zeros((B, hid), jnp.float32)
    codes = jnp.zeros((B, S), jnp.int32)
    ppl_sum = jnp.float32(0.0)
    inv_b = jnp.float32(1.0 / B)

    # static unroll over splits; codebook blocks stay resident in VMEM
    for i in range(S):
        # cross_i = z_i @ e_i^T via block-placed codebook (zero rows outside
        # split i contribute exactly 0), so no lane slicing of z is needed.
        cross = jnp.dot(z, cbT_ref[i], preferred_element_type=jnp.float32)   # (B,K)
        # distance proxy: |e|^2 - 2 z.e  (per-row |z|^2 dropped; same argmin)
        dist = esq_ref[i] - 2.0 * cross                                      # (B,K)
        dmin = jnp.min(dist, axis=1, keepdims=True)                          # (B,1)
        # first index attaining the min (torch.argmin tie-break)
        idx = jnp.min(jnp.where(dist == dmin, lane_k, K), axis=1,
                      keepdims=True)                                         # (B,1) i32
        onehot = (lane_k == idx).astype(jnp.float32)                         # (B,K)

        # quantized rows land directly in columns i*D:(i+1)*D of (B, hid)
        quant = quant + jnp.dot(onehot, cbP_ref[i],
                                preferred_element_type=jnp.float32)
        # lane-dense (B, S) code slab built with a select, no width-1 stores
        codes = jnp.where(col_s == i, idx, codes)

        avg_probs = jnp.sum(onehot, axis=0, keepdims=True) * inv_b           # (1,K)
        ppl_sum = ppl_sum + jnp.exp(
            -jnp.sum(avg_probs * jnp.log(avg_probs + 1e-10)))

    quant_ref[...] = quant
    codes_ref[...] = codes
    # decoder: x_recon = quantized @ W_d + b_d
    recon_ref[...] = (jnp.dot(quant, dec_w_ref[...],
                              preferred_element_type=jnp.float32)
                      + dec_b_ref[...])
    ppl_ref[0, 0] = ppl_sum * jnp.float32(1.0 / S)


def vqvae_forward(x, enc_w, enc_b, cb_T_placed, cb_placed, e_sq, dec_w, dec_b):
    B, input_dim = x.shape
    S, hid, K = cb_T_placed.shape
    recon, quant, codes, ppl = pl.pallas_call(
        _fused_vqvae_kernel,
        out_shape=(
            jax.ShapeDtypeStruct((B, input_dim), jnp.float32),
            jax.ShapeDtypeStruct((B, hid), jnp.float32),
            jax.ShapeDtypeStruct((B, S), jnp.int32),
            jax.ShapeDtypeStruct((1, 1), jnp.float32),
        ),
        in_specs=[pl.BlockSpec(memory_space=VMEM)] * 8,
        out_specs=(
            pl.BlockSpec(memory_space=VMEM),
            pl.BlockSpec(memory_space=VMEM),
            pl.BlockSpec(memory_space=VMEM),
            pl.BlockSpec(memory_space=SMEM),
        ),
    )(x, enc_w, enc_b, cb_T_placed, cb_placed, e_sq, dec_w, dec_b)
    return recon, quant, codes, ppl[0, 0]


# ----------------------------------------------------------------------------
# Model wrapper: parameter construction + one fused kernel call
# ----------------------------------------------------------------------------
class MultiDimVQVAE:
    def __init__(self, input_dim, num_embeddings, embedding_dim, num_splits, key):
        self.input_dim = input_dim
        self.num_embeddings = num_embeddings
        self.embedding_dim = embedding_dim
        self.num_splits = num_splits
        hid = embedding_dim * num_splits

        k_ew, k_eb, k_dw, k_db, k_cb = jax.random.split(key, 5)
        lim_e = 1.0 / (input_dim ** 0.5)
        lim_d = 1.0 / (hid ** 0.5)
        # weights stored (in, out) so kernels compute x @ W; biases row-shaped.
        self.enc_w = jax.random.uniform(k_ew, (input_dim, hid), jnp.float32,
                                        -lim_e, lim_e)
        self.enc_b = jax.random.uniform(k_eb, (1, hid), jnp.float32, -lim_e, lim_e)
        self.dec_w = jax.random.uniform(k_dw, (hid, input_dim), jnp.float32,
                                        -lim_d, lim_d)
        self.dec_b = jax.random.uniform(k_db, (1, input_dim), jnp.float32,
                                        -lim_d, lim_d)
        # codebooks: uniform(-1/K, 1/K), one per split
        self.codebooks = jax.random.uniform(
            k_cb, (num_splits, num_embeddings, embedding_dim), jnp.float32,
            -1.0 / num_embeddings, 1.0 / num_embeddings)

        # --- input-independent precomputation (done once at init) -----------
        S, K, D = num_splits, num_embeddings, embedding_dim
        # squared codebook norms, already row-shaped (no in-kernel transpose)
        self.e_sq = jnp.sum(self.codebooks * self.codebooks, axis=2)[:, None, :]  # (S,1,K)
        # block-placed codebooks: cross term and quantized placement become
        # plain full-block matmuls inside the kernel.
        cbT = jnp.zeros((S, hid, K), jnp.float32)
        cbP = jnp.zeros((S, K, hid), jnp.float32)
        for i in range(S):
            cbT = cbT.at[i, i * D:(i + 1) * D, :].set(self.codebooks[i].T)
            cbP = cbP.at[i, :, i * D:(i + 1) * D].set(self.codebooks[i])
        self.cb_T_placed = cbT
        self.cb_placed = cbP

    def __call__(self, x):
        return vqvae_forward(x, self.enc_w, self.enc_b,
                             self.cb_T_placed, self.cb_placed, self.e_sq,
                             self.dec_w, self.dec_b)


# ----------------------------------------------------------------------------
# Pure-JAX reference (mirrors the PyTorch forward) for a sanity check
# ----------------------------------------------------------------------------
def reference_forward(model, x):
    S, D = model.num_splits, model.embedding_dim
    z = x @ model.enc_w + model.enc_b
    qs, cs, ps = [], [], []
    for i in range(S):
        zi = z[:, i * D:(i + 1) * D]
        e = model.codebooks[i]
        d = (jnp.sum(zi * zi, 1, keepdims=True) + jnp.sum(e * e, 1)[None, :]
             - 2.0 * zi @ e.T)
        idx = jnp.argmin(d, axis=1)
        qs.append(e[idx])
        cs.append(idx.astype(jnp.int32)[:, None])
        onehot = jax.nn.one_hot(idx, model.num_embeddings, dtype=jnp.float32)
        p = jnp.mean(onehot, axis=0)
        ps.append(jnp.exp(-jnp.sum(p * jnp.log(p + 1e-10))))
    quant = jnp.concatenate(qs, axis=1)
    x_recon = quant @ model.dec_w + model.dec_b
    return x_recon, quant, jnp.concatenate(cs, axis=1), jnp.mean(jnp.stack(ps))


if __name__ == "__main__":
    # small shapes consistent with the module
    batch = 8
    input_dim = 32
    num_embeddings = 16
    embedding_dim = 8
    num_splits = 4

    key = jax.random.PRNGKey(0)
    k_param, k_x = jax.random.split(key)
    model = MultiDimVQVAE(input_dim, num_embeddings, embedding_dim,
                          num_splits, k_param)
    x = jax.random.normal(k_x, (batch, input_dim), jnp.float32)

    x_recon, quantized, codes, avg_ppl = model(x)
    jax.block_until_ready((x_recon, quantized, codes, avg_ppl))

    # sanity check against pure-JAX reference
    r_recon, r_quant, r_codes, r_ppl = reference_forward(model, x)
    assert x_recon.shape == (batch, input_dim)
    assert quantized.shape == (batch, embedding_dim * num_splits)
    assert codes.shape == (batch, num_splits)
    assert jnp.allclose(x_recon, r_recon, atol=1e-4, rtol=1e-4)
    assert jnp.allclose(quantized, r_quant, atol=1e-4, rtol=1e-4)
    assert bool(jnp.all(codes == r_codes))
    assert jnp.allclose(avg_ppl, r_ppl, atol=1e-4, rtol=1e-4)

    print("KERNEL_OK")
</pallas_src>

<mosaic_0001>
module attributes {stable_mosaic.version = 11 : i64} {
  func.func @_fused_vqvae_kernel(%arg0: memref<8x32xf32, #tpu.memory_space<vmem>>, %arg1: memref<32x32xf32, #tpu.memory_space<vmem>>, %arg2: memref<1x32xf32, #tpu.memory_space<vmem>>, %arg3: memref<4x32x16xf32, #tpu.memory_space<vmem>>, %arg4: memref<4x16x32xf32, #tpu.memory_space<vmem>>, %arg5: memref<4x1x16xf32, #tpu.memory_space<vmem>>, %arg6: memref<32x32xf32, #tpu.memory_space<vmem>>, %arg7: memref<1x32xf32, #tpu.memory_space<vmem>>, %arg8: memref<8x32xf32, #tpu.memory_space<vmem>>, %arg9: memref<8x32xf32, #tpu.memory_space<vmem>>, %arg10: memref<8x4xi32, #tpu.memory_space<vmem>>, %arg11: memref<1x1xf32, #tpu.memory_space<smem>>) attributes {dimension_semantics = [], scalar_prefetch = 0 : i64, scratch_operands = 0 : i64, tpu.core_type = #tpu.core_type<tc>} {
    %c0 = arith.constant 0 : index
    %c0_0 = arith.constant 0 : index
    %0 = vector.load %arg0[%c0, %c0_0] : memref<8x32xf32, #tpu.memory_space<vmem>>, vector<8x32xf32>
    %c0_1 = arith.constant 0 : index
    %c0_2 = arith.constant 0 : index
    %1 = vector.load %arg1[%c0_1, %c0_2] : memref<32x32xf32, #tpu.memory_space<vmem>>, vector<32x32xf32>
    %cst = arith.constant dense<0.000000e+00> : vector<8x32xf32>
    %2 = tpu.matmul %0, %1, %cst {dimension_numbers = #tpu.dot_dimension_numbers<[1], [0], [0], [1], [0, 0, 1, 1], [], []>} : vector<8x32xf32>, vector<32x32xf32>, vector<8x32xf32> -> vector<8x32xf32>
    %c0_3 = arith.constant 0 : index
    %c0_4 = arith.constant 0 : index
    %3 = vector.load %arg2[%c0_3, %c0_4] : memref<1x32xf32, #tpu.memory_space<vmem>>, vector<1x32xf32>
    %4 = vector.broadcast %3 : vector<1x32xf32> to vector<8x32xf32>
    %5 = arith.addf %2, %4 : vector<8x32xf32>
    %6 = tpu.iota {dimensions = array<i32: 1>} : vector<8x16xi32>
    %7 = tpu.iota {dimensions = array<i32: 1>} : vector<8x4xi32>
    %cst_5 = arith.constant 0.000000e+00 : f32
    %8 = vector.broadcast %cst_5 : f32 to vector<8x32xf32>
    %c0_i32 = arith.constant 0 : i32
    %9 = vector.broadcast %c0_i32 : i32 to vector<8x4xi32>
    %c0_6 = arith.constant 0 : index
    %c0_7 = arith.constant 0 : index
    %c0_8 = arith.constant 0 : index
    %10 = vector.load %arg3[%c0_6, %c0_7, %c0_8] : memref<4x32x16xf32, #tpu.memory_space<vmem>>, vector<1x32x16xf32>
    %11 = vector.shape_cast %10 : vector<1x32x16xf32> to vector<32x16xf32>
    %cst_9 = arith.constant dense<0.000000e+00> : vector<8x16xf32>
    %12 = tpu.matmul %5, %11, %cst_9 {dimension_numbers = #tpu.dot_dimension_numbers<[1], [0], [0], [1], [0, 0, 1, 1], [], []>} : vector<8x32xf32>, vector<32x16xf32>, vector<8x16xf32> -> vector<8x16xf32>
    %c0_10 = arith.constant 0 : index
    %c0_11 = arith.constant 0 : index
    %c0_12 = arith.constant 0 : index
    %13 = vector.load %arg5[%c0_10, %c0_11, %c0_12] : memref<4x1x16xf32, #tpu.memory_space<vmem>>, vector<1x1x16xf32>
    %14 = vector.shape_cast %13 : vector<1x1x16xf32> to vector<1x16xf32>
    %cst_13 = arith.constant 2.000000e+00 : f32
    %15 = vector.broadcast %cst_13 : f32 to vector<8x16xf32>
    %16 = arith.mulf %15, %12 : vector<8x16xf32>
    %17 = vector.broadcast %14 : vector<1x16xf32> to vector<8x16xf32>
    %18 = arith.subf %17, %16 : vector<8x16xf32>
    %cst_14 = arith.constant dense<0x7F800000> : vector<8xf32>
    %19 = vector.multi_reduction <minimumf>, %18, %cst_14 [1] : vector<8x16xf32> to vector<8xf32>
    %20 = vector.shape_cast %19 : vector<8xf32> to vector<8x1xf32>
    %21 = vector.broadcast %20 : vector<8x1xf32> to vector<8x16xf32>
    %22 = arith.cmpf oeq, %18, %21 : vector<8x16xf32>
    %c16_i32 = arith.constant 16 : i32
    %23 = vector.broadcast %c16_i32 : i32 to vector<8x16xi32>
    %24 = arith.select %22, %6, %23 : vector<8x16xi1>, vector<8x16xi32>
    %cst_15 = arith.constant dense<2147483647> : vector<8xi32>
    %25 = vector.multi_reduction <minsi>, %24, %cst_15 [1] : vector<8x16xi32> to vector<8xi32>
    %26 = vector.shape_cast %25 : vector<8xi32> to vector<8x1xi32>
    %27 = vector.broadcast %26 : vector<8x1xi32> to vector<8x16xi32>
    %28 = arith.cmpi eq, %6, %27 : vector<8x16xi32>
    %29 = arith.extui %28 : vector<8x16xi1> to vector<8x16xi32>
    %30 = arith.sitofp %29 : vector<8x16xi32> to vector<8x16xf32>
    %c0_16 = arith.constant 0 : index
    %c0_17 = arith.constant 0 : index
    %c0_18 = arith.constant 0 : index
    %31 = vector.load %arg4[%c0_16, %c0_17, %c0_18] : memref<4x16x32xf32, #tpu.memory_space<vmem>>, vector<1x16x32xf32>
    %32 = vector.shape_cast %31 : vector<1x16x32xf32> to vector<16x32xf32>
    %cst_19 = arith.constant dense<0.000000e+00> : vector<8x32xf32>
    %33 = tpu.matmul %30, %32, %cst_19 {dimension_numbers = #tpu.dot_dimension_numbers<[1], [0], [0], [1], [0, 0, 1, 1], [], []>} : vector<8x16xf32>, vector<16x32xf32>, vector<8x32xf32> -> vector<8x32xf32>
    %34 = arith.addf %8, %33 : vector<8x32xf32>
    %c0_i32_20 = arith.constant 0 : i32
    %35 = vector.broadcast %c0_i32_20 : i32 to vector<8x4xi32>
    %36 = arith.cmpi eq, %7, %35 : vector<8x4xi32>
    %37 = vector.shape_cast %26 : vector<8x1xi32> to vector<8x1xi32>
    %38 = vector.broadcast %37 : vector<8x1xi32> to vector<8x4xi32>
    %39 = arith.select %36, %38, %9 : vector<8x4xi1>, vector<8x4xi32>
    %cst_21 = arith.constant dense<0.000000e+00> : vector<16xf32>
    %40 = vector.multi_reduction <add>, %30, %cst_21 [0] : vector<8x16xf32> to vector<16xf32>
    %41 = vector.shape_cast %40 : vector<16xf32> to vector<1x16xf32>
    %cst_22 = arith.constant 1.250000e-01 : f32
    %42 = vector.broadcast %cst_22 : f32 to vector<1x16xf32>
    %43 = arith.mulf %41, %42 : vector<1x16xf32>
    %cst_23 = arith.constant 1.000000e-10 : f32
    %44 = vector.broadcast %cst_23 : f32 to vector<1x16xf32>
    %45 = arith.addf %43, %44 : vector<1x16xf32>
    %46 = math.log %45 : vector<1x16xf32>
    %47 = arith.mulf %43, %46 : vector<1x16xf32>
    %48 = vector.shape_cast %47 : vector<1x16xf32> to vector<1x1x16xf32>
    %cst_24 = arith.constant dense<0.000000e+00> : vector<1xf32>
    %49 = vector.multi_reduction <add>, %48, %cst_24 [1, 2] : vector<1x1x16xf32> to vector<1xf32>
    %50 = vector.shape_cast %49 : vector<1xf32> to vector<1x1x1xf32>
    %51 = vector.extract %50[0, 0, 0] : f32 from vector<1x1x1xf32>
    %cst_25 = arith.constant 0.000000e+00 : f32
    %52 = arith.subf %cst_25, %51 : f32
    %53 = math.exp %52 : f32
    %cst_26 = arith.constant 0.000000e+00 : f32
    %54 = arith.addf %cst_26, %53 : f32
    %c1 = arith.constant 1 : index
    %c0_27 = arith.constant 0 : index
    %c0_28 = arith.constant 0 : index
    %55 = vector.load %arg3[%c1, %c0_27, %c0_28] : memref<4x32x16xf32, #tpu.memory_space<vmem>>, vector<1x32x16xf32>
    %56 = vector.shape_cast %55 : vector<1x32x16xf32> to vector<32x16xf32>
    %cst_29 = arith.constant dense<0.000000e+00> : vector<8x16xf32>
    %57 = tpu.matmul %5, %56, %cst_29 {dimension_numbers = #tpu.dot_dimension_numbers<[1], [0], [0], [1], [0, 0, 1, 1], [], []>} : vector<8x32xf32>, vector<32x16xf32>, vector<8x16xf32> -> vector<8x16xf32>
    %c1_30 = arith.constant 1 : index
    %c0_31 = arith.constant 0 : index
    %c0_32 = arith.constant 0 : index
    %58 = vector.load %arg5[%c1_30, %c0_31, %c0_32] : memref<4x1x16xf32, #tpu.memory_space<vmem>>, vector<1x1x16xf32>
    %59 = vector.shape_cast %58 : vector<1x1x16xf32> to vector<1x16xf32>
    %cst_33 = arith.constant 2.000000e+00 : f32
    %60 = vector.broadcast %cst_33 : f32 to vector<8x16xf32>
    %61 = arith.mulf %60, %57 : vector<8x16xf32>
    %62 = vector.broadcast %59 : vector<1x16xf32> to vector<8x16xf32>
    %63 = arith.subf %62, %61 : vector<8x16xf32>
    %cst_34 = arith.constant dense<0x7F800000> : vector<8xf32>
    %64 = vector.multi_reduction <minimumf>, %63, %cst_34 [1] : vector<8x16xf32> to vector<8xf32>
    %65 = vector.shape_cast %64 : vector<8xf32> to vector<8x1xf32>
    %66 = vector.broadcast %65 : vector<8x1xf32> to vector<8x16xf32>
    %67 = arith.cmpf oeq, %63, %66 : vector<8x16xf32>
    %c16_i32_35 = arith.constant 16 : i32
    %68 = vector.broadcast %c16_i32_35 : i32 to vector<8x16xi32>
    %69 = arith.select %67, %6, %68 : vector<8x16xi1>, vector<8x16xi32>
    %cst_36 = arith.constant dense<2147483647> : vector<8xi32>
    %70 = vector.multi_reduction <minsi>, %69, %cst_36 [1] : vector<8x16xi32> to vector<8xi32>
    %71 = vector.shape_cast %70 : vector<8xi32> to vector<8x1xi32>
    %72 = vector.broadcast %71 : vector<8x1xi32> to vector<8x16xi32>
    %73 = arith.cmpi eq, %6, %72 : vector<8x16xi32>
    %74 = arith.extui %73 : vector<8x16xi1> to vector<8x16xi32>
    %75 = arith.sitofp %74 : vector<8x16xi32> to vector<8x16xf32>
    %c1_37 = arith.constant 1 : index
    %c0_38 = arith.constant 0 : index
    %c0_39 = arith.constant 0 : index
    %76 = vector.load %arg4[%c1_37, %c0_38, %c0_39] : memref<4x16x32xf32, #tpu.memory_space<vmem>>, vector<1x16x32xf32>
    %77 = vector.shape_cast %76 : vector<1x16x32xf32> to vector<16x32xf32>
    %cst_40 = arith.constant dense<0.000000e+00> : vector<8x32xf32>
    %78 = tpu.matmul %75, %77, %cst_40 {dimension_numbers = #tpu.dot_dimension_numbers<[1], [0], [0], [1], [0, 0, 1, 1], [], []>} : vector<8x16xf32>, vector<16x32xf32>, vector<8x32xf32> -> vector<8x32xf32>
    %79 = arith.addf %34, %78 : vector<8x32xf32>
    %c1_i32 = arith.constant 1 : i32
    %80 = vector.broadcast %c1_i32 : i32 to vector<8x4xi32>
    %81 = arith.cmpi eq, %7, %80 : vector<8x4xi32>
    %82 = vector.shape_cast %71 : vector<8x1xi32> to vector<8x1xi32>
    %83 = vector.broadcast %82 : vector<8x1xi32> to vector<8x4xi32>
    %84 = arith.select %81, %83, %39 : vector<8x4xi1>, vector<8x4xi32>
    %cst_41 = arith.constant dense<0.000000e+00> : vector<16xf32>
    %85 = vector.multi_reduction <add>, %75, %cst_41 [0] : vector<8x16xf32> to vector<16xf32>
    %86 = vector.shape_cast %85 : vector<16xf32> to vector<1x16xf32>
    %cst_42 = arith.constant 1.250000e-01 : f32
    %87 = vector.broadcast %cst_42 : f32 to vector<1x16xf32>
    %88 = arith.mulf %86, %87 : vector<1x16xf32>
    %cst_43 = arith.constant 1.000000e-10 : f32
    %89 = vector.broadcast %cst_43 : f32 to vector<1x16xf32>
    %90 = arith.addf %88, %89 : vector<1x16xf32>
    %91 = math.log %90 : vector<1x16xf32>
    %92 = arith.mulf %88, %91 : vector<1x16xf32>
    %93 = vector.shape_cast %92 : vector<1x16xf32> to vector<1x1x16xf32>
    %cst_44 = arith.constant dense<0.000000e+00> : vector<1xf32>
    %94 = vector.multi_reduction <add>, %93, %cst_44 [1, 2] : vector<1x1x16xf32> to vector<1xf32>
    %95 = vector.shape_cast %94 : vector<1xf32> to vector<1x1x1xf32>
    %96 = vector.extract %95[0, 0, 0] : f32 from vector<1x1x1xf32>
    %cst_45 = arith.constant 0.000000e+00 : f32
    %97 = arith.subf %cst_45, %96 : f32
    %98 = math.exp %97 : f32
    %99 = arith.addf %54, %98 : f32
    %c2 = arith.constant 2 : index
    %c0_46 = arith.constant 0 : index
    %c0_47 = arith.constant 0 : index
    %100 = vector.load %arg3[%c2, %c0_46, %c0_47] : memref<4x32x16xf32, #tpu.memory_space<vmem>>, vector<1x32x16xf32>
    %101 = vector.shape_cast %100 : vector<1x32x16xf32> to vector<32x16xf32>
    %cst_48 = arith.constant dense<0.000000e+00> : vector<8x16xf32>
    %102 = tpu.matmul %5, %101, %cst_48 {dimension_numbers = #tpu.dot_dimension_numbers<[1], [0], [0], [1], [0, 0, 1, 1], [], []>} : vector<8x32xf32>, vector<32x16xf32>, vector<8x16xf32> -> vector<8x16xf32>
    %c2_49 = arith.constant 2 : index
    %c0_50 = arith.constant 0 : index
    %c0_51 = arith.constant 0 : index
    %103 = vector.load %arg5[%c2_49, %c0_50, %c0_51] : memref<4x1x16xf32, #tpu.memory_space<vmem>>, vector<1x1x16xf32>
    %104 = vector.shape_cast %103 : vector<1x1x16xf32> to vector<1x16xf32>
    %cst_52 = arith.constant 2.000000e+00 : f32
    %105 = vector.broadcast %cst_52 : f32 to vector<8x16xf32>
    %106 = arith.mulf %105, %102 : vector<8x16xf32>
    %107 = vector.broadcast %104 : vector<1x16xf32> to vector<8x16xf32>
    %108 = arith.subf %107, %106 : vector<8x16xf32>
    %cst_53 = arith.constant dense<0x7F800000> : vector<8xf32>
    %109 = vector.multi_reduction <minimumf>, %108, %cst_53 [1] : vector<8x16xf32> to vector<8xf32>
    %110 = vector.shape_cast %109 : vector<8xf32> to vector<8x1xf32>
    %111 = vector.broadcast %110 : vector<8x1xf32> to vector<8x16xf32>
    %112 = arith.cmpf oeq, %108, %111 : vector<8x16xf32>
    %c16_i32_54 = arith.constant 16 : i32
    %113 = vector.broadcast %c16_i32_54 : i32 to vector<8x16xi32>
    %114 = arith.select %112, %6, %113 : vector<8x16xi1>, vector<8x16xi32>
    %cst_55 = arith.constant dense<2147483647> : vector<8xi32>
    %115 = vector.multi_reduction <minsi>, %114, %cst_55 [1] : vector<8x16xi32> to vector<8xi32>
    %116 = vector.shape_cast %115 : vector<8xi32> to vector<8x1xi32>
    %117 = vector.broadcast %116 : vector<8x1xi32> to vector<8x16xi32>
    %118 = arith.cmpi eq, %6, %117 : vector<8x16xi32>
    %119 = arith.extui %118 : vector<8x16xi1> to vector<8x16xi32>
    %120 = arith.sitofp %119 : vector<8x16xi32> to vector<8x16xf32>
    %c2_56 = arith.constant 2 : index
    %c0_57 = arith.constant 0 : index
    %c0_58 = arith.constant 0 : index
    %121 = vector.load %arg4[%c2_56, %c0_57, %c0_58] : memref<4x16x32xf32, #tpu.memory_space<vmem>>, vector<1x16x32xf32>
    %122 = vector.shape_cast %121 : vector<1x16x32xf32> to vector<16x32xf32>
    %cst_59 = arith.constant dense<0.000000e+00> : vector<8x32xf32>
    %123 = tpu.matmul %120, %122, %cst_59 {dimension_numbers = #tpu.dot_dimension_numbers<[1], [0], [0], [1], [0, 0, 1, 1], [], []>} : vector<8x16xf32>, vector<16x32xf32>, vector<8x32xf32> -> vector<8x32xf32>
    %124 = arith.addf %79, %123 : vector<8x32xf32>
    %c2_i32 = arith.constant 2 : i32
    %125 = vector.broadcast %c2_i32 : i32 to vector<8x4xi32>
    %126 = arith.cmpi eq, %7, %125 : vector<8x4xi32>
    %127 = vector.shape_cast %116 : vector<8x1xi32> to vector<8x1xi32>
    %128 = vector.broadcast %127 : vector<8x1xi32> to vector<8x4xi32>
    %129 = arith.select %126, %128, %84 : vector<8x4xi1>, vector<8x4xi32>
    %cst_60 = arith.constant dense<0.000000e+00> : vector<16xf32>
    %130 = vector.multi_reduction <add>, %120, %cst_60 [0] : vector<8x16xf32> to vector<16xf32>
    %131 = vector.shape_cast %130 : vector<16xf32> to vector<1x16xf32>
    %cst_61 = arith.constant 1.250000e-01 : f32
    %132 = vector.broadcast %cst_61 : f32 to vector<1x16xf32>
    %133 = arith.mulf %131, %132 : vector<1x16xf32>
    %cst_62 = arith.constant 1.000000e-10 : f32
    %134 = vector.broadcast %cst_62 : f32 to vector<1x16xf32>
    %135 = arith.addf %133, %134 : vector<1x16xf32>
    %136 = math.log %135 : vector<1x16xf32>
    %137 = arith.mulf %133, %136 : vector<1x16xf32>
    %138 = vector.shape_cast %137 : vector<1x16xf32> to vector<1x1x16xf32>
    %cst_63 = arith.constant dense<0.000000e+00> : vector<1xf32>
    %139 = vector.multi_reduction <add>, %138, %cst_63 [1, 2] : vector<1x1x16xf32> to vector<1xf32>
    %140 = vector.shape_cast %139 : vector<1xf32> to vector<1x1x1xf32>
    %141 = vector.extract %140[0, 0, 0] : f32 from vector<1x1x1xf32>
    %cst_64 = arith.constant 0.000000e+00 : f32
    %142 = arith.subf %cst_64, %141 : f32
    %143 = math.exp %142 : f32
    %144 = arith.addf %99, %143 : f32
    %c3 = arith.constant 3 : index
    %c0_65 = arith.constant 0 : index
    %c0_66 = arith.constant 0 : index
    %145 = vector.load %arg3[%c3, %c0_65, %c0_66] : memref<4x32x16xf32, #tpu.memory_space<vmem>>, vector<1x32x16xf32>
    %146 = vector.shape_cast %145 : vector<1x32x16xf32> to vector<32x16xf32>
    %cst_67 = arith.constant dense<0.000000e+00> : vector<8x16xf32>
    %147 = tpu.matmul %5, %146, %cst_67 {dimension_numbers = #tpu.dot_dimension_numbers<[1], [0], [0], [1], [0, 0, 1, 1], [], []>} : vector<8x32xf32>, vector<32x16xf32>, vector<8x16xf32> -> vector<8x16xf32>
    %c3_68 = arith.constant 3 : index
    %c0_69 = arith.constant 0 : index
    %c0_70 = arith.constant 0 : index
    %148 = vector.load %arg5[%c3_68, %c0_69, %c0_70] : memref<4x1x16xf32, #tpu.memory_space<vmem>>, vector<1x1x16xf32>
    %149 = vector.shape_cast %148 : vector<1x1x16xf32> to vector<1x16xf32>
    %cst_71 = arith.constant 2.000000e+00 : f32
    %150 = vector.broadcast %cst_71 : f32 to vector<8x16xf32>
    %151 = arith.mulf %150, %147 : vector<8x16xf32>
    %152 = vector.broadcast %149 : vector<1x16xf32> to vector<8x16xf32>
    %153 = arith.subf %152, %151 : vector<8x16xf32>
    %cst_72 = arith.constant dense<0x7F800000> : vector<8xf32>
    %154 = vector.multi_reduction <minimumf>, %153, %cst_72 [1] : vector<8x16xf32> to vector<8xf32>
    %155 = vector.shape_cast %154 : vector<8xf32> to vector<8x1xf32>
    %156 = vector.broadcast %155 : vector<8x1xf32> to vector<8x16xf32>
    %157 = arith.cmpf oeq, %153, %156 : vector<8x16xf32>
    %c16_i32_73 = arith.constant 16 : i32
    %158 = vector.broadcast %c16_i32_73 : i32 to vector<8x16xi32>
    %159 = arith.select %157, %6, %158 : vector<8x16xi1>, vector<8x16xi32>
    %cst_74 = arith.constant dense<2147483647> : vector<8xi32>
    %160 = vector.multi_reduction <minsi>, %159, %cst_74 [1] : vector<8x16xi32> to vector<8xi32>
    %161 = vector.shape_cast %160 : vector<8xi32> to vector<8x1xi32>
    %162 = vector.broadcast %161 : vector<8x1xi32> to vector<8x16xi32>
    %163 = arith.cmpi eq, %6, %162 : vector<8x16xi32>
    %164 = arith.extui %163 : vector<8x16xi1> to vector<8x16xi32>
    %165 = arith.sitofp %164 : vector<8x16xi32> to vector<8x16xf32>
    %c3_75 = arith.constant 3 : index
    %c0_76 = arith.constant 0 : index
    %c0_77 = arith.constant 0 : index
    %166 = vector.load %arg4[%c3_75, %c0_76, %c0_77] : memref<4x16x32xf32, #tpu.memory_space<vmem>>, vector<1x16x32xf32>
    %167 = vector.shape_cast %166 : vector<1x16x32xf32> to vector<16x32xf32>
    %cst_78 = arith.constant dense<0.000000e+00> : vector<8x32xf32>
    %168 = tpu.matmul %165, %167, %cst_78 {dimension_numbers = #tpu.dot_dimension_numbers<[1], [0], [0], [1], [0, 0, 1, 1], [], []>} : vector<8x16xf32>, vector<16x32xf32>, vector<8x32xf32> -> vector<8x32xf32>
    %169 = arith.addf %124, %168 : vector<8x32xf32>
    %c3_i32 = arith.constant 3 : i32
    %170 = vector.broadcast %c3_i32 : i32 to vector<8x4xi32>
    %171 = arith.cmpi eq, %7, %170 : vector<8x4xi32>
    %172 = vector.shape_cast %161 : vector<8x1xi32> to vector<8x1xi32>
    %173 = vector.broadcast %172 : vector<8x1xi32> to vector<8x4xi32>
    %174 = arith.select %171, %173, %129 : vector<8x4xi1>, vector<8x4xi32>
    %cst_79 = arith.constant dense<0.000000e+00> : vector<16xf32>
    %175 = vector.multi_reduction <add>, %165, %cst_79 [0] : vector<8x16xf32> to vector<16xf32>
    %176 = vector.shape_cast %175 : vector<16xf32> to vector<1x16xf32>
    %cst_80 = arith.constant 1.250000e-01 : f32
    %177 = vector.broadcast %cst_80 : f32 to vector<1x16xf32>
    %178 = arith.mulf %176, %177 : vector<1x16xf32>
    %cst_81 = arith.constant 1.000000e-10 : f32
    %179 = vector.broadcast %cst_81 : f32 to vector<1x16xf32>
    %180 = arith.addf %178, %179 : vector<1x16xf32>
    %181 = math.log %180 : vector<1x16xf32>
    %182 = arith.mulf %178, %181 : vector<1x16xf32>
    %183 = vector.shape_cast %182 : vector<1x16xf32> to vector<1x1x16xf32>
    %cst_82 = arith.constant dense<0.000000e+00> : vector<1xf32>
    %184 = vector.multi_reduction <add>, %183, %cst_82 [1, 2] : vector<1x1x16xf32> to vector<1xf32>
    %185 = vector.shape_cast %184 : vector<1xf32> to vector<1x1x1xf32>
    %186 = vector.extract %185[0, 0, 0] : f32 from vector<1x1x1xf32>
    %cst_83 = arith.constant 0.000000e+00 : f32
    %187 = arith.subf %cst_83, %186 : f32
    %188 = math.exp %187 : f32
    %189 = arith.addf %144, %188 : f32
    %c0_84 = arith.constant 0 : index
    %c0_85 = arith.constant 0 : index
    %190 = vector.load %arg9[%c0_84, %c0_85] : memref<8x32xf32, #tpu.memory_space<vmem>>, vector<8x32xf32>
    tpu.vector_store %arg9[%c0_84, %c0_85], %169 {strides = array<i32>} : memref<8x32xf32, #tpu.memory_space<vmem>>, vector<8x32xf32>,
    %c0_86 = arith.constant 0 : index
    %c0_87 = arith.constant 0 : index
    %191 = vector.load %arg10[%c0_86, %c0_87] : memref<8x4xi32, #tpu.memory_space<vmem>>, vector<8x4xi32>
    tpu.vector_store %arg10[%c0_86, %c0_87], %174 {strides = array<i32>} : memref<8x4xi32, #tpu.memory_space<vmem>>, vector<8x4xi32>,
    %c0_88 = arith.constant 0 : index
    %c0_89 = arith.constant 0 : index
    %192 = vector.load %arg6[%c0_88, %c0_89] : memref<32x32xf32, #tpu.memory_space<vmem>>, vector<32x32xf32>
    %cst_90 = arith.constant dense<0.000000e+00> : vector<8x32xf32>
    %193 = tpu.matmul %169, %192, %cst_90 {dimension_numbers = #tpu.dot_dimension_numbers<[1], [0], [0], [1], [0, 0, 1, 1], [], []>} : vector<8x32xf32>, vector<32x32xf32>, vector<8x32xf32> -> vector<8x32xf32>
    %c0_91 = arith.constant 0 : index
    %c0_92 = arith.constant 0 : index
    %194 = vector.load %arg7[%c0_91, %c0_92] : memref<1x32xf32, #tpu.memory_space<vmem>>, vector<1x32xf32>
    %195 = vector.broadcast %194 : vector<1x32xf32> to vector<8x32xf32>
    %196 = arith.addf %193, %195 : vector<8x32xf32>
    %c0_93 = arith.constant 0 : index
    %c0_94 = arith.constant 0 : index
    %197 = vector.load %arg8[%c0_93, %c0_94] : memref<8x32xf32, #tpu.memory_space<vmem>>, vector<8x32xf32>
    tpu.vector_store %arg8[%c0_93, %c0_94], %196 {strides = array<i32>} : memref<8x32xf32, #tpu.memory_space<vmem>>, vector<8x32xf32>,
    %cst_95 = arith.constant 2.500000e-01 : f32
    %198 = arith.mulf %189, %cst_95 : f32
    %c0_96 = arith.constant 0 : index
    %c0_97 = arith.constant 0 : index
    %199 = memref.load %arg11[%c0_96, %c0_97] : memref<1x1xf32, #tpu.memory_space<smem>>
    memref.store %198, %arg11[%c0_96, %c0_97] : memref<1x1xf32, #tpu.memory_space<smem>>
    return
  }
}

</mosaic_0001>

<bundles_post_ra>
// kernel: tpu_custom_call.1
= control target key start
LH: loop header
LB: loop body
LE: loop exit
PB: predicated region body
PF: predicated region fallthrough
CT: control target
= control target key end

     0   :  { %17 = vsyncpa [#allocation3], 0  ;;  %s1010_s0 = inlined_call_operand.vmem [shape: f32[8,32], index: 0, kind: input, shape index: {}]   ;;  %s1011_s1 = inlined_call_operand.vmem [shape: f32[32,32], index: 1, kind: input, shape index: {}]   ;;  %s1012_s2 = inlined_call_operand.vmem [shape: f32[1,32], index: 2, kind: input, shape index: {}]   ;;  %s1013_s3 = inlined_call_operand.vmem [shape: f32[4,32,16], index: 3, kind: input, shape index: {}]   ;;  %s1014_s4 = inlined_call_operand.vmem [shape: f32[4,16,32], index: 4, kind: input, shape index: {}]   ;;  %s1015_s5 = inlined_call_operand.vmem [shape: f32[4,1,16], index: 5, kind: input, shape index: {}]   ;;  %s1016_s6 = inlined_call_operand.vmem [shape: f32[32,32], index: 6, kind: input, shape index: {}]   ;;  %s1017_s7 = inlined_call_operand.vmem [shape: f32[1,32], index: 7, kind: input, shape index: {}]   ;;  %s1018_s8 = inlined_call_operand.hbm [shape: f32[8,32], index: 8, kind: output, shape index: {0}]   ;;  %s1019_s9 = inlined_call_operand.hbm [shape: f32[8,32], index: 9, kind: output, shape index: {1}]   ;;  %s1020_s10 = inlined_call_operand.vmem [shape: s32[8,4], index: 10, kind: output, shape index: {2}]   ;;  %s1021_s11 = inlined_call_operand.hbm [shape: f32[1,1], index: 11, kind: output, shape index: {3}]  }
   0x1   :  { %18 = vsyncpa [#allocation6], 0  ;;  %v40_v0 = vld [vmem:[%s1011_s1 + $0x18] sm:$0xff]  ;;  %v39_v1 = vld [vmem:[%s1011_s1 + $0x10] sm:$0xff]  ;;  %vm45_vm0 = vcmask 261120  }
   0x2   :  { %61 = vmatpush.msra.mxu0 %v40_v0  ;;  %v74_v2 = vld [vmem:[%s1013_s3 + $0x18] sm:$0xff]  ;;  %v38_v3 = vld [vmem:[%s1011_s1 + $0x8] sm:$0xff]  ;;  %v73_v5 = vld [vmem:[%s1013_s3 + $0x10] sm:$0xff] }
   0x3   :  { %90 = vmatpush.msra.mxu1 %v74_v2  ;;  %v614_v4 = vld [vmem:[%s1013_s3 + $0x38] sm:$0xff]  ;;  %v37_v6 = vld [vmem:[%s1011_s1] sm:$0xff]  ;;  %v613_v7 = vld [vmem:[%s1013_s3 + $0x30] sm:$0xff] }
   0x4   :  { %62 = vmatpush.msra.mxu0 %v39_v1  ;;  %178 = vmatpush.msra.mxu2 %v614_v4  ;;  %v36_v8 = vld [vmem:[%s1010_s0] sm:$0xff]  ;;  %v625_v9 = vld [vmem:[%s1013_s3 + $0x58] sm:$0xff] }
   0x5   :  { %91 = vmatpush.msra.mxu1 %v73_v5 }
   0x6   :  { %63 = vmatpush.msra.mxu0 %v38_v3  ;;  %179 = vmatpush.msra.mxu2 %v613_v7 }
   0x7   :  { %19 = vsyncpa [#allocation4], 0  ;;  %v624_v10 = vld [vmem:[%s1013_s3 + $0x50] sm:$0xff]  ;;  %v72_v11 = vld [vmem:[%s1013_s3 + $0x8] sm:$0xff]  ;;  %vm104_vm1 = vcmask 130048   ;;  %v69_v34 = vlaneseq  ;;  %vm144_vm13 = vcmask 122880  }
   0x8   :  { %64 = vmatpush.msra.mxu0 %v37_v6  ;;  %v612_v12 = vld [vmem:[%s1013_s3 + $0x28] sm:$0xff]  ;;  %92 = vmatpush.msra.mxu1 %v72_v11  ;;  %v71_v14 = vld [vmem:[%s1013_s3] sm:$0xff]  ;;  %v635_v17 = vld [vmem:[%s1013_s3 + $0x78] sm:$0xff]  ;;  %s752_s13 = smov [#allocation5]   ;;  %s575_s17 = sshll.u32 %s1019_s9, 4  ;;  %s576_s17 = int_to_ptr.hbm [resolvable:$true] %s575_s17 }
   0x9   :  { %608 = vmatmul.msk.f32.vlgmr.msra.gmra.mxu0 %vm45_vm0, %v36_v8  ;;  %v623_v13 = vld [vmem:[%s1013_s3 + $0x48] sm:$0xff]  ;;  %180 = vmatpush.msra.mxu2 %v612_v12  ;;  %v611_v15 = vld [vmem:[%s1013_s3 + $0x20] sm:$0xff]  ;;  %v634_v18 = vld [vmem:[%s1013_s3 + $0x70] sm:$0xff]  ;;  %v894_v35 = vand.u32 127, %v69_v34  ;;  %s573_s14 = sshll.u32 %s752_s13, 4  ;;  %s753_s0 = smov [#allocation2]   ;;  %s574_s14 = int_to_ptr.vmem [resolvable:$true] %s573_s14 }
   0xa   :  { %312 = vmatpush.msrb.mxu0 %v625_v9  ;;  %v622_v16 = vld [vmem:[%s1013_s3 + $0x40] sm:$0xff]  ;;  %93 = vmatpush.msra.mxu1 %v71_v14  ;;  %v633_v19 = vld [vmem:[%s1013_s3 + $0x68] sm:$0xff]  ;;  %v618_v11 = vld [vmem:[%s1014_s4 + $0x10] sm:$0xff] }
   0xb   :  { %181 = vmatpush.msra.mxu2 %v611_v15  ;;  %v632_v20 = vld [vmem:[%s1013_s3 + $0x60] sm:$0xff]  ;;  %v129_v12 = vld [vmem:[%s1014_s4 + $0x8] sm:$0xff]  ;;  %vm130_vm9 = vcmp.eq.s32.totalorder %v894_v35, 0  ;;  %vm265_vm10 = vcmp.eq.s32.totalorder %v894_v35, 1  ;;  %s564_s3 = sshll.u32 %s1018_s8, 4  ;;  %s565_s3 = int_to_ptr.hbm [resolvable:$true] %s564_s3 }
   0xc   :  { %313 = vmatpush.msrb.mxu0 %v624_v10  ;;  %v663_v21 = vld [vmem:[%s1012_s2] ss:$0 sm:$0xff]  ;;  %v665_v29 = vld [vmem:[%s1015_s5 + $0x1] ss:$0 sm:$0xff]  ;;  %v667_v44 = vld [vmem:[%s1015_s5 + $0x2] ss:$0 sm:$0xff] }
   0xd   :  { %424 = vmatpush.msrb.mxu2 %v635_v17  ;;  %v664_v24 = vld [vmem:[%s1015_s5] ss:$0 sm:$0xff]  ;;  %v666_v52 = vld [vmem:[%s1015_s5 + $0x3] ss:$0 sm:$0xff]  ;;  %v619_v10 = vld [vmem:[%s1014_s4 + $0x18] sm:$0xff] }
   0xe   :  { %314 = vmatpush.msrb.mxu0 %v623_v13  ;;  %236 = vmatpush.msra.mxu3 %v619_v10  ;;  %v128_v13 = vld [vmem:[%s1014_s4] sm:$0xff] }
   0xf   :  { %425 = vmatpush.msrb.mxu2 %v634_v18 }
  0x10   :  { %315 = vmatpush.msrb.mxu0 %v622_v16  ;;  %237 = vmatpush.msra.mxu3 %v618_v11 }
  0x11   :  { %426 = vmatpush.msrb.mxu2 %v633_v19 }
  0x12   :  { %259 = vmatpush.msrb.mxu3 %v129_v12 }
  0x13   :  { %427 = vmatpush.msrb.mxu2 %v632_v20  ;;  %v751_v20 = vmov 0.0  }
  0x14   :  { %260 = vmatpush.msrb.mxu3 %v128_v13 }
  0x86   :  { %v66_v22 = vpop.f32.mrf.mxu0 }
  0x87   :  { %v67_v23 = vadd.f32 %v663_v21, %v66_v22 }
  0x89   :  { %609 = vmatmul.msk.f32.vlgmr.msra.gmra.mxu1 %vm45_vm0, %v67_v23  ;;  %615 = vmatmul.msk.f32.vlgmr.msra.gmra.mxu2 %vm45_vm0, %v67_v23 }
  0x8a   :  { %626 = vmatmul.msk.f32.vlgmr.msrb.gmra.mxu0 %vm45_vm0, %v67_v23 }
  0x91   :  { %636 = vmatmul.msk.f32.vlgmr.msrb.gmra.mxu2 %vm45_vm0, %v67_v23 }
 0x106   :  { %v95_v25 = vpop.f32.mrf.mxu1 }
 0x107   :  { %v99_v26 = vmul.f32 2.0, %v95_v25  ;;  %v317_v39 = vpop.f32.mrf.mxu0 }
 0x108   :  { %v322_v43 = vmul.f32 2.0, %v317_v39 }
 0x109   :  { %v103_v27 = vsub.f32 %v664_v24, %v99_v26 }
 0x10a   :  { %v326_v49 = vsub.f32 %v667_v44, %v322_v43 }
 0x10b   :  { %v105_v28 = vsel %vm104_vm1, %v103_v27, inf }
 0x10c   :  { %v183_v30 = vpop.f32.mrf.mxu2  ;;  %106 = vmin.xlane.f32.xlu0 %v105_v28  ;;  %v327_v53 = vsel %vm104_vm1, %v326_v49, inf }
 0x10d   :  { %v188_v31 = vmul.f32 2.0, %v183_v30 }
 0x10f   :  { %v192_v32 = vsub.f32 %v665_v29, %v188_v31 }
 0x111   :  { %v193_v33 = vsel %vm104_vm1, %v192_v32, inf }
 0x112   :  { %194 = vmin.xlane.f32.xlu1 %v193_v33 }
 0x114   :  { %v429_v47 = vpop.f32.mrf.mxu2 }
 0x115   :  { %v434_v51 = vmul.f32 2.0, %v429_v47 }
 0x117   :  { %v438_v54 = vsub.f32 %v666_v52, %v434_v51 }
 0x119   :  { %v439_v55 = vsel %vm104_vm1, %v438_v54, inf }
 0x17f   :  { %v107_v36 = vpop.xlane.xlu0 %106 }
 0x180   :  { %vm108_vm2 = vcmp.eq.f32.partialorder %v103_v27, %v107_v36 }
 0x181   :  { %v109_v37 = vsel %vm108_vm2, %v894_v35, 16  ;;  %vm377_vm2 = vcmp.eq.s32.totalorder %v894_v35, 2 }
 0x182   :  { %v110_v38 = vsel %vm104_vm1, %v109_v37, 2147483647 }
 0x183   :  { %v112_v40 = vshra.s32 %v110_v38, 16  ;;  %v111_v56 = vand.u32 65535, %v110_v38 }
 0x185   :  { %v195_v41 = vpop.xlane.xlu1 %194  ;;  %v114_v42 = vcvt.s32.f32 %v112_v40  ;;  %v113_v58 = vcvt.s32.f32 %v111_v56 }
 0x186   :  { %vm196_vm3 = vcmp.eq.f32.partialorder %v192_v32, %v195_v41 }
 0x187   :  { %v197_v45 = vsel %vm196_vm3, %v894_v35, 16  ;;  %115 = vmin.xlane.f32.xlu0 %v114_v42  ;;  %vm489_vm3 = vcmp.eq.s32.totalorder %v894_v35, 3 }
 0x188   :  { %v198_v46 = vsel %vm104_vm1, %v197_v45, 2147483647 }
 0x189   :  { %v200_v48 = vshra.s32 %v198_v46, 16  ;;  %v199_v60 = vand.u32 65535, %v198_v46 }
 0x18b   :  { %v202_v50 = vcvt.s32.f32 %v200_v48  ;;  %v201_v63 = vcvt.s32.f32 %v199_v60 }
 0x18d   :  { %203 = vmin.xlane.f32.xlu2 %v202_v50 }
 0x18f   :  { %328 = vmin.xlane.f32.xlu0 %v327_v53 }
 0x195   :  { %440 = vmin.xlane.f32.xlu2 %v439_v55 }
 0x1fa   :  { %v116_v57 = vpop.xlane.xlu0 %115 }
 0x1fb   :  { %vm117_vm4 = vcmp.eq.f32.partialorder %v114_v42, %v116_v57  ;;  %v122_v14 = vcvt.f32.s32 %v116_v57 }
 0x1fc   :  { %v118_v59 = vsel %vm117_vm4, %v113_v58, inf  ;;  %vm520_vm4 = vcmask 31744  }
 0x1fd   :  { %119 = vmin.xlane.f32.xlu1 %v118_v59  ;;  %v123_v16 = vshll.u32 %v122_v14, 16 }
 0x200   :  { %v204_v61 = vpop.xlane.xlu2 %203 }
 0x201   :  { %vm205_vm5 = vcmp.eq.f32.partialorder %v202_v50, %v204_v61  ;;  %v210_v19 = vcvt.f32.s32 %v204_v61 }
 0x202   :  { %v329_v62 = vpop.xlane.xlu0 %328  ;;  %v206_v1 = vsel %vm205_vm5, %v201_v63, inf }
 0x203   :  { %vm330_vm6 = vcmp.eq.f32.partialorder %v326_v49, %v329_v62  ;;  %v211_v25 = vshll.u32 %v210_v19, 16 }
 0x204   :  { %v331_v0 = vsel %vm330_vm6, %v894_v35, 16 }
 0x205   :  { %v332_v2 = vsel %vm104_vm1, %v331_v0, 2147483647  ;;  %207 = vmin.xlane.f32.xlu1 %v206_v1  ;;  %v630_v0 = vld [vmem:[%s1014_s4 + $0x28] sm:$0xff]  ;;  %v629_v1 = vld [vmem:[%s1014_s4 + $0x20] sm:$0xff] }
 0x206   :  { %v334_v3 = vshra.s32 %v332_v2, 16  ;;  %v333_v30 = vand.u32 65535, %v332_v2  ;;  %370 = vmatpush.msrb.mxu1 %v630_v0  ;;  %v522_v0 = vld [vmem:[%s1016_s6] sm:$0xff] }
 0x208   :  { %v441_v4 = vpop.xlane.xlu2 %440  ;;  %v336_v7 = vcvt.s32.f32 %v334_v3  ;;  %v335_v39 = vcvt.s32.f32 %v333_v30  ;;  %371 = vmatpush.msrb.mxu1 %v629_v1  ;;  %v640_v3 = vld [vmem:[%s1014_s4 + $0x38] sm:$0xff] }
 0x209   :  { %vm442_vm7 = vcmp.eq.f32.partialorder %v438_v54, %v441_v4  ;;  %v639_v4 = vld [vmem:[%s1014_s4 + $0x30] sm:$0xff] }
 0x20a   :  { %v443_v5 = vsel %vm442_vm7, %v894_v35, 16 }
 0x20b   :  { %v912_v6 = vsel %vm104_vm1, %v443_v5, 2147483647 }
 0x20c   :  { %v446_v8 = vshra.s32 %v912_v6, 16  ;;  %v445_v57 = vand.u32 65535, %v912_v6 }
 0x20d   :  { %337 = vmin.xlane.f32.xlu1 %v336_v7 }
 0x20e   :  { %v915_v9 = vcvt.s32.f32 %v446_v8  ;;  %v447_v60 = vcvt.s32.f32 %v445_v57 }
 0x210   :  { %449 = vmin.xlane.f32.xlu0 %v915_v9 }
 0x270   :  { %v120_v15 = vpop.xlane.xlu1 %119 }
 0x271   :  { %v121_v17 = vcvt.f32.s32 %v120_v15 }
 0x273   :  { %v124_v18 = vadd.s32 %v123_v16, %v121_v17 }
 0x275   :  { %vm125_vm8 = vcmp.eq.s32.totalorder %v894_v35, %v124_v18  ;;  %v131_v29 = vsel %vm130_vm9, %v124_v18, 0 }
 0x276   :  { %v610_v21 = vsel %vm125_vm8, 1.0, %v751_v20 }
 0x277   :  { %v132_v22 = vsel %vm104_vm1, %v610_v21, 0.0 }
 0x278   :  { %v208_v23 = vpop.xlane.xlu1 %207  ;;  %v133_v24 = vrot.slane %v132_v22, 4 }
 0x279   :  { %v209_v26 = vcvt.f32.s32 %v208_v23 }
 0x27a   :  { %v134_v27 = vadd.f32 %v133_v24, %v132_v22 }
 0x27b   :  { %v212_v28 = vadd.s32 %v211_v25, %v209_v26 }
 0x27c   :  { %v135_v31 = vrot.slane %v134_v27, 2 }
 0x27d   :  { %v935_v32 = vsel %vm265_vm10, %v212_v28, %v131_v29  ;;  %vm213_vm11 = vcmp.eq.s32.totalorder %v894_v35, %v212_v28 }
 0x27e   :  { %v617_v33 = vsel %vm213_vm11, 1.0, %v751_v20  ;;  %v136_v34 = vadd.f32 %v135_v31, %v134_v27 }
 0x27f   :  { %620 = vmatmul.msk.f32.vlgmr.msra.gmra.mxu3 %vm104_vm1, %v617_v33  ;;  %v267_v36 = vsel %vm104_vm1, %v617_v33, 0.0 }
 0x280   :  { %v268_v37 = vrot.slane %v267_v36, 4  ;;  %v338_v38 = vpop.xlane.xlu1 %337  ;;  %v137_v40 = vrot.slane %v136_v34, 1  ;;  %482 = vmatpush.msra.mxu3 %v640_v3 }
 0x281   :  { %vm339_vm12 = vcmp.eq.f32.partialorder %v336_v7, %v338_v38  ;;  %v344_v2 = vcvt.f32.s32 %v338_v38 }
 0x282   :  { %v269_v41 = vadd.f32 %v268_v37, %v267_v36  ;;  %v340_v42 = vsel %vm339_vm12, %v335_v39, inf  ;;  %v138_v43 = vadd.f32 %v137_v40, %v136_v34  ;;  %483 = vmatpush.msra.mxu3 %v639_v4 }
 0x283   :  { %341 = vmin.xlane.f32.xlu0 %v340_v42  ;;  %v450_v56 = vpop.xlane.xlu0 %449  ;;  %v345_v6 = vshll.u32 %v344_v2, 16 }
 0x284   :  { %v270_v44 = vrot.slane %v269_v41, 2  ;;  %v139_v45 = vmul.f32 0.125, %v138_v43  ;;  %vm451_vm14 = vcmp.eq.f32.partialorder %v915_v9, %v450_v56  ;;  %v456_v22 = vcvt.f32.s32 %v450_v56 }
 0x285   :  { %v452_v62 = vsel %vm451_vm14, %v447_v60, inf }
 0x286   :  { %v271_v46 = vadd.f32 %v270_v44, %v269_v41  ;;  %v140_v47 = vadd.f32 1e-10, %v139_v45  ;;  %v457_v27 = vshll.u32 %v456_v22, 16 }
 0x287   :  { %621 = vmatmul.msk.f32.vlgmr.msrb.gmra.mxu3 %vm104_vm1, %v610_v21 }
 0x288   :  { %669 = vlog2.f32 %v140_v47  ;;  %v272_v48 = vrot.slane %v271_v46, 1 }
 0x28a   :  { %v273_v49 = vadd.f32 %v272_v48, %v271_v46 }
 0x28c   :  { %v274_v50 = vmul.f32 0.125, %v273_v49 }
 0x28e   :  { %v670_v51 = vpop.eup %669  ;;  %v275_v52 = vadd.f32 1e-10, %v274_v50 }
 0x28f   :  { %v142_v53 = vmul.f32 0.6931472, %v670_v51 }
 0x290   :  { %671 = vlog2.f32 %v275_v52 }
 0x291   :  { %v143_v54 = vmul.f32 %v142_v53, %v139_v45 }
 0x293   :  { %v145_v55 = vsel %vm144_vm13, %v143_v54, 0.0 }
 0x294   :  { %146 = vadd.xlane.f32.xlu2 %v145_v55 }
 0x296   :  { %v672_v58 = vpop.eup %671 }
 0x297   :  { %v277_v59 = vmul.f32 0.6931472, %v672_v58 }
 0x299   :  { %v278_v61 = vmul.f32 %v277_v59, %v274_v50 }
 0x29b   :  { %v279_v63 = vsel %vm144_vm13, %v278_v61, 0.0  ;;  %v525_v61 = vld [vmem:[%s1016_s6 + $0x18] sm:$0xff] }
 0x29c   :  { %453 = vmin.xlane.f32.xlu2 %v452_v62  ;;  %280 = vadd.xlane.f32.xlu1 %v279_v63  ;;  %v524_v62 = vld [vmem:[%s1016_s6 + $0x10] sm:$0xff]  ;;  %v523_v63 = vld [vmem:[%s1016_s6 + $0x8] sm:$0xff] }
 0x29d   :  { %545 = vmatpush.msra.mxu0 %v525_v61 }
 0x29f   :  { %546 = vmatpush.msra.mxu0 %v524_v62 }
 0x2a1   :  { %547 = vmatpush.msra.mxu0 %v523_v63 }
 0x2a3   :  { %548 = vmatpush.msra.mxu0 %v522_v0 }
 0x2f6   :  { %v342_v5 = vpop.xlane.xlu0 %341 }
 0x2f7   :  { %v343_v7 = vcvt.f32.s32 %v342_v5 }
 0x2f9   :  { %v346_v8 = vadd.s32 %v345_v6, %v343_v7 }
 0x2fb   :  { %vm347_vm15 = vcmp.eq.s32.totalorder %v894_v35, %v346_v8  ;;  %v378_v33 = vsel %vm377_vm2, %v346_v8, %v935_v32 }
 0x2fc   :  { %v628_v9 = vsel %vm347_vm15, 1.0, %v751_v20 }
 0x2fd   :  { %631 = vmatmul.msk.f32.vlgmr.msrb.gmra.mxu1 %vm104_vm1, %v628_v9  ;;  %v379_v10 = vsel %vm104_vm1, %v628_v9, 0.0 }
 0x2fe   :  { %v380_v11 = vrot.slane %v379_v10, 4 }
 0x300   :  { %v381_v12 = vadd.f32 %v380_v11, %v379_v10 }
 0x302   :  { %v382_v13 = vrot.slane %v381_v12, 2  ;;  %v239_v1 = vpop.f32.mrf.mxu3 }
 0x304   :  { %v383_v14 = vadd.f32 %v382_v13, %v381_v12 }
 0x306   :  { %v384_v15 = vrot.slane %v383_v14, 1 }
 0x307   :  { %v147_v16 = vpop.xlane.xlu2 %146 }
 0x308   :  { %v148_v17 = vrot.slane %v147_v16, 4  ;;  %v385_v18 = vadd.f32 %v384_v15, %v383_v14 }
 0x30a   :  { %v149_v19 = vadd.f32 %v148_v17, %v147_v16  ;;  %v386_v21 = vmul.f32 0.125, %v385_v18  ;;  %v262_v8 = vpop.f32.mrf.mxu3 }
 0x30b   :  { %v263_v12 = vadd.f32 %v262_v8, %v239_v1 }
 0x30c   :  { %v150_v23 = vrot.slane %v149_v19, 2  ;;  %v387_v24 = vadd.f32 1e-10, %v386_v21 }
 0x30e   :  { %v151_v25 = vadd.f32 %v150_v23, %v149_v19  ;;  %673 = vlog2.f32 %v387_v24 }
 0x30f   :  { %v454_v26 = vpop.xlane.xlu2 %453  ;;  %v281_v51 = vpop.xlane.xlu1 %280 }
 0x310   :  { %v455_v28 = vcvt.f32.s32 %v454_v26  ;;  %v152_v29 = vrot.slane %v151_v25, 1  ;;  %v282_v52 = vrot.slane %v281_v51, 4 }
 0x312   :  { %v458_v30 = vadd.s32 %v457_v27, %v455_v28  ;;  %v153_v31 = vadd.f32 %v152_v29, %v151_v25  ;;  %v283_v53 = vadd.f32 %v282_v52, %v281_v51 }
 0x314   :  { %v674_v34 = vpop.eup %673  ;;  %vm459_vm5 = vcmp.eq.s32.totalorder %v894_v35, %v458_v30  ;;  %v490_v36 = vsel %vm489_vm3, %v458_v30, %v378_v33  ;;  %643 = vpush %v153_v31  ;;  %v284_v54 = vrot.slane %v283_v53, 2  ;;  %v668_v33 = vld [vmem:[%s1017_s7] ss:$0 sm:$0xff]  ;;  %s586_s7 = sshll.u32 %s1021_s11, 4  ;;  %s587_s7 = int_to_ptr.hbm [resolvable:$true] %s586_s7 }
 0x315   :  { %v638_v37 = vsel %vm459_vm5, 1.0, %v751_v20  ;;  %521 = vst.msk [vmem:[%s1020_s10] sm:$0xff] %vm520_vm4, %v490_v36  ;;  %v389_v38 = vmul.f32 0.6931472, %v674_v34 }
 0x316   :  { %v491_v39 = vsel %vm104_vm1, %v638_v37, 0.0  ;;  %641 = vmatmul.msk.f32.vlgmr.msra.gmra.mxu3 %vm104_vm1, %v638_v37  ;;  %v285_v56 = vadd.f32 %v284_v54, %v283_v53 }
 0x317   :  { %v492_v40 = vrot.slane %v491_v39, 4  ;;  %v390_v41 = vmul.f32 %v389_v38, %v386_v21 }
 0x318   :  { %v286_v58 = vrot.slane %v285_v56, 1 }
 0x319   :  { %v493_v42 = vadd.f32 %v492_v40, %v491_v39  ;;  %v391_v32 = vsel %vm144_vm13, %v390_v41, 0.0 }
 0x31a   :  { %392 = vadd.xlane.f32.xlu2 %v391_v32  ;;  %v287_v60 = vadd.f32 %v286_v58, %v285_v56 }
 0x31b   :  { %v494_v35 = vrot.slane %v493_v42, 2 }
 0x31d   :  { %v495_v43 = vadd.f32 %v494_v35, %v493_v42 }
 0x31f   :  { %v496_v44 = vrot.slane %v495_v43, 1 }
 0x321   :  { %v497_v45 = vadd.f32 %v496_v44, %v495_v43 }
 0x323   :  { %v498_v20 = vmul.f32 0.125, %v497_v45 }
 0x325   :  { %v499_v46 = vadd.f32 1e-10, %v498_v20 }
 0x327   :  { %675 = vlog2.f32 %v499_v46 }
 0x32d   :  { %v676_v47 = vpop.eup %675 }
 0x32e   :  { %v501_v48 = vmul.f32 0.6931472, %v676_v47 }
 0x330   :  { %v502_v49 = vmul.f32 %v501_v48, %v498_v20 }
 0x332   :  { %v503_v50 = vsel %vm144_vm13, %v502_v49, 0.0 }
 0x333   :  { %504 = vadd.xlane.f32.xlu0 %v503_v50 }
 0x345   :  { %s644_s10 = spop %643 }
 0x346   :  { %s155_s20 = ssub.f32 0.0, %s644_s10  ;;  %s562_s10 = sshll.u32 %s753_s0, 4  ;;  %s563_s10 = int_to_ptr.vmem [resolvable:$true] %s562_s10 }
 0x348   :  { %v156_v55 = vstv %s155_s20 }
 0x349   :  { %v157_v57 = vmul.f32 1.442695, %v156_v55 }
 0x34b   :  { %677 = vpow2.f32 %v157_v57 }
 0x351   :  { %v678_v59 = vpop.eup %677 }
 0x352   :  { %645 = vpush %v678_v59 }
 0x353   :  { %647 = vpush %v287_v60 }
 0x37a   :  { %v373_v11 = vpop.f32.mrf.mxu1 }
 0x37b   :  { %v376_v14 = vadd.f32 %v373_v11, %v263_v12 }
 0x383   :  { %s986_s26 = spop %645 }
 0x384   :  { %s648_s27 = spop %647 }
 0x385   :  { %s289_s28 = ssub.f32 0.0, %s648_s27  ;;  %s754_s27 = smov [#allocation7]  }
 0x387   :  { %v290_v2 = vstv %s289_s28 }
 0x388   :  { %v291_v3 = vmul.f32 1.442695, %v290_v2 }
 0x38a   :  { %679 = vpow2.f32 %v291_v3 }
 0x38d   :  { %v393_v4 = vpop.xlane.xlu2 %392 }
 0x38e   :  { %v394_v5 = vrot.slane %v393_v4, 4 }
 0x390   :  { %v680_v6 = vpop.eup %679  ;;  %v395_v7 = vadd.f32 %v394_v5, %v393_v4 }
 0x391   :  { %649 = vpush %v680_v6 }
 0x392   :  { %v396_v9 = vrot.slane %v395_v7, 2 }
 0x394   :  { %v397_v10 = vadd.f32 %v396_v9, %v395_v7 }
 0x396   :  { %v398_v13 = vrot.slane %v397_v10, 1 }
 0x398   :  { %v399_v15 = vadd.f32 %v398_v13, %v397_v10 }
 0x399   :  { %v485_v16 = vpop.f32.mrf.mxu3 }
 0x39a   :  { %v488_v17 = vadd.f32 %v485_v16, %v376_v14  ;;  %651 = vpush %v399_v15 }
 0x39c   :  { %519 = vst.msk [vmem:[#allocation5] sm:$0xff] %vm45_vm0, %v488_v17  ;;  %642 = vmatmul.msk.f32.vlgmr.msra.gmra.mxu0 %vm45_vm0, %v488_v17 }
 0x39d   :  { %578 = dma.vmem_to_hbm [thread:$0]  %s574_s14, 128, %s576_s17, [#allocation6]  }
 0x3a6   :  { %v505_v18 = vpop.xlane.xlu0 %504 }
 0x3a7   :  { %v506_v19 = vrot.slane %v505_v18, 4 }
 0x3a9   :  { %v507_v21 = vadd.f32 %v506_v19, %v505_v18 }
 0x3ab   :  { %v508_v22 = vrot.slane %v507_v21, 2 }
 0x3ad   :  { %v509_v24 = vadd.f32 %v508_v22, %v507_v21 }
 0x3af   :  { %v510_v26 = vrot.slane %v509_v24, 1 }
 0x3b1   :  { %v511_v28 = vadd.f32 %v510_v26, %v509_v24 }
 0x3c2   :  { %s990_s6 = spop %649 }
 0x3c3   :  { %s294_s29 = sadd.f32 %s990_s6, %s986_s26 }
 0x3cb   :  { %s652_s30 = spop %651 }
 0x3cc   :  { %s401_s12 = ssub.f32 0.0, %s652_s30 }
 0x3ce   :  { %v402_v23 = vstv %s401_s12 }
 0x3cf   :  { %v403_v25 = vmul.f32 1.442695, %v402_v23 }
 0x3d1   :  { %681 = vpow2.f32 %v403_v25 }
 0x3d7   :  { %v682_v27 = vpop.eup %681 }
 0x3d8   :  { %653 = vpush %v682_v27 }
 0x3d9   :  { %655 = vpush %v511_v28 }
 0x409   :  { %s654_s1 = spop %653 }
 0x40a   :  { %s656_s18 = spop %655  ;;  %s406_s21 = sadd.f32 %s654_s1, %s294_s29 }
 0x40b   :  { %s513_s19 = ssub.f32 0.0, %s656_s18 }
 0x40d   :  { %v514_v29 = vstv %s513_s19 }
 0x40e   :  { %v515_v30 = vmul.f32 1.442695, %v514_v29 }
 0x410   :  { %683 = vpow2.f32 %v515_v30 }
 0x416   :  { %v684_v31 = vpop.eup %683 }
 0x417   :  { %657 = vpush %v684_v31 }
 0x419   :  { %v550_v34 = vpop.f32.mrf.mxu0 }
 0x41a   :  { %v551_v36 = vadd.f32 %v668_v33, %v550_v34 }
 0x41c   :  { %553 = vst.msk [vmem:[#allocation2] sm:$0xff] %vm45_vm0, %v551_v36 }
 0x41d   :  { %567 = dma.vmem_to_hbm [thread:$0]  %s563_s10, 128, %s565_s3, [#allocation3]  }
 0x448   :  { %s658_s22 = spop %657 }
 0x449   :  { %s518_s5 = sadd.f32 %s658_s22, %s406_s21 }
 0x44b   :  { %s554_s25 = smul.f32 0.25, %s518_s5 }
 0x44d   :  { %556 = sst [smem:[#allocation7]] %s554_s25 }
 0x44e   :  { %589 = dma.smem_to_hbm %s754_s27, 16, %s587_s7, [#allocation4]  }
 0x44f   :  { %745 = dma.done.wait [#allocation3], 128  }
 0x450   :  { %746 = vsyncadd [#allocation3], 4294967168 }
 0x451   :  { %747 = dma.done.wait [#allocation6], 128  }
 0x452   :  { %748 = vsyncadd [#allocation6], 4294967168 }
 0x453   :  { %749 = dma.done.wait [#allocation4], 16  }
 0x454   :  { %750 = vsyncadd [#allocation4], 4294967280 }
 0x455   :  { %604 = sfence }
 0x456   :  { %605 = vsyncpa [#allocation3], 1 }
 0x457   :  { %606 = vsyncpa [#allocation6], 1 }
 0x458   :  { %607 = vsyncpa [#allocation4], 1 }

</bundles_post_ra>
